<compile_context>
chip_gen: v7x
topology: tpu7x:2x2x1
jax: 0.10.0
libtpu: 0.0.40
codegen_flags: <defaults>
</compile_context>

<pallas_src>
import functools

import jax
import jax.numpy as jnp
from jax.experimental import pallas as pl
from jax.experimental.pallas import tpu as pltpu


def rnn_seq_kernel(x_ref, h0_ref, wx_ref, wh_ref, b_ref,
                   out_ref, hT_ref, *, seq_len, batch_pad, hidden_size):
    """Run `seq_len` RNN-cell steps with weights resident in VMEM.

    x_ref  : (seq_len*batch_pad, I)  inputs, flattened over time
    h0_ref : (batch_pad, H)          initial hidden
    wx_ref : (I, H+O)                fused [Wxh | Wxo]
    wh_ref : (H, H+O)                fused [Whh | Who]
    b_ref  : (1, H+O)                fused [b_i2h | b_i2o]
    out_ref: (seq_len*batch_pad, O)  per-step log-softmax outputs
    hT_ref : (batch_pad, H)          final hidden
    """
    # Hoisted input projection for ALL timesteps (+ fused bias): one large,
    # well-shaped MXU matmul instead of `seq_len` tiny ones in the serial loop.
    xp = jnp.dot(x_ref[...], wx_ref[...],
                 preferred_element_type=jnp.float32) + b_ref[...]
    wh = wh_ref[...]

    h = h0_ref[...]
    # seq_len is a trace-time constant (names are short) -> static unroll with
    # static slices. For very long sequences switch to lax.fori_loop + pl.ds.
    for t in range(seq_len):
        lo, hi = t * batch_pad, (t + 1) * batch_pad
        # Only this K=H matmul sits on the serial dependence chain.
        fused = xp[lo:hi, :] + jnp.dot(h, wh,
                                       preferred_element_type=jnp.float32)
        h = fused[:, :hidden_size]          # i2h(combined)  -> new hidden
        logits = fused[:, hidden_size:]     # i2o(combined)
        # numerically stable log_softmax over the O categories (f32 everywhere)
        m = jnp.max(logits, axis=1, keepdims=True)
        shifted = logits - m
        lse = jnp.log(jnp.sum(jnp.exp(shifted), axis=1, keepdims=True))
        out_ref[lo:hi, :] = (shifted - lse).astype(out_ref.dtype)

    hT_ref[...] = h.astype(hT_ref.dtype)


def _full_spec(shape):
    return pl.BlockSpec(shape, lambda: (0,) * len(shape))


@jax.jit
def rnn_forward_seq(xs, h0, w_i2h, b_i2h, w_i2o, b_i2o):
    """Run the RNN cell over a whole sequence with ONE kernel launch.

    xs    : (SEQ, B, I)   inputs (e.g. one-hot letters)
    h0    : (B, H)        initial hidden
    w_i2h : (I+H, H)      i2h weight (transposed vs. torch.nn.Linear)
    b_i2h : (H,)
    w_i2o : (I+H, O)      i2o weight (transposed vs. torch.nn.Linear)
    b_i2o : (O,)
    returns (per-step log_softmax outputs (SEQ, B, O), final hidden (B, H))
    """
    seq, batch, input_size = xs.shape
    hidden_size = h0.shape[1]
    output_size = w_i2o.shape[1]
    n_fused = hidden_size + output_size

    # One-time parameter fusion (plain JAX, under jit, outside the recurrence):
    #   [Wxh | Wxo] : (I, H+O),  [Whh | Who] : (H, H+O),  [bh | bo] : (1, H+O)
    wx = jnp.concatenate([w_i2h[:input_size], w_i2o[:input_size]], axis=1)
    wh = jnp.concatenate([w_i2h[input_size:], w_i2o[input_size:]], axis=1)
    b = jnp.concatenate([b_i2h, b_i2o]).reshape(1, n_fused)

    # Pad batch to the f32 sublane tile (8) so vreg sublanes / MXU rows are used.
    batch_pad = max(8, ((batch + 7) // 8) * 8)
    if batch_pad != batch:
        xs = jnp.pad(xs, ((0, 0), (0, batch_pad - batch), (0, 0)))
        h0 = jnp.pad(h0, ((0, batch_pad - batch), (0, 0)))
    x2 = xs.reshape(seq * batch_pad, input_size)

    kernel = functools.partial(rnn_seq_kernel, seq_len=seq,
                               batch_pad=batch_pad, hidden_size=hidden_size)

    out_flat, h_t = pl.pallas_call(
        kernel,
        out_shape=(jax.ShapeDtypeStruct((seq * batch_pad, output_size),
                                        jnp.float32),
                   jax.ShapeDtypeStruct((batch_pad, hidden_size), jnp.float32)),
        grid=(),
        in_specs=[_full_spec((seq * batch_pad, input_size)),
                  _full_spec((batch_pad, hidden_size)),
                  _full_spec((input_size, n_fused)),
                  _full_spec((hidden_size, n_fused)),
                  _full_spec((1, n_fused))],
        out_specs=(_full_spec((seq * batch_pad, output_size)),
                   _full_spec((batch_pad, hidden_size))),
    )(x2, h0, wx, wh, b)

    out = out_flat.reshape(seq, batch_pad, output_size)[:, :batch, :]
    return out, h_t[:batch, :]


def rnn_forward(x, h, w_i2h, b_i2h, w_i2o, b_i2o):
    """Single cell step, matching RNN.forward(input, hidden) of the module."""
    out, h_new = rnn_forward_seq(x[None], h, w_i2h, b_i2h, w_i2o, b_i2o)
    return out[0], h_new


def rnn_forward_ref(x, h, w_i2h, b_i2h, w_i2o, b_i2o):
    """Pure-JAX reference mirroring the PyTorch forward."""
    combined = jnp.concatenate([x, h], axis=1)
    hidden = combined @ w_i2h + b_i2h
    logits = combined @ w_i2o + b_i2o
    return jax.nn.log_softmax(logits, axis=1), hidden


if __name__ == "__main__":
    # Small shapes consistent with the module (char-RNN name classifier).
    B = 2            # batch (module uses 1; forward supports any B, padded to 8)
    INPUT = 32       # "n_letters"
    HIDDEN = 64
    OUTPUT = 16      # "n_categories"
    SEQ = 8          # sequence length for evaluate()-style loop

    key = jax.random.PRNGKey(0)
    k1, k2, k3, k4, k5 = jax.random.split(key, 5)

    # Deterministic synthetic parameters (nn.Linear-shaped, stored transposed).
    bound = 1.0 / jnp.sqrt(INPUT + HIDDEN)
    w_i2h = jax.random.uniform(k1, (INPUT + HIDDEN, HIDDEN),
                               jnp.float32, -bound, bound)
    b_i2h = jax.random.uniform(k2, (HIDDEN,), jnp.float32, -bound, bound)
    w_i2o = jax.random.uniform(k3, (INPUT + HIDDEN, OUTPUT),
                               jnp.float32, -bound, bound)
    b_i2o = jax.random.uniform(k4, (OUTPUT,), jnp.float32, -bound, bound)

    # One-hot input sequence (like lineToTensor), shape (SEQ, B, INPUT).
    idx = jax.random.randint(k5, (SEQ, B), 0, INPUT)
    line = jax.nn.one_hot(idx, INPUT, dtype=jnp.float32)

    h0 = jnp.zeros((B, HIDDEN), jnp.float32)

    # evaluate(): whole sequence in ONE kernel launch.
    outs, h_last = rnn_forward_seq(line, h0, w_i2h, b_i2h, w_i2o, b_i2o)
    outs = jax.block_until_ready(outs)
    h_last = jax.block_until_ready(h_last)

    # Pure-JAX reference: per-step cell loop, like the PyTorch evaluate().
    h_ref = h0
    outs_ref = []
    for t in range(SEQ):
        o_ref, h_ref = rnn_forward_ref(line[t], h_ref,
                                       w_i2h, b_i2h, w_i2o, b_i2o)
        outs_ref.append(o_ref)
    outs_ref = jnp.stack(outs_ref)

    assert outs.shape == (SEQ, B, OUTPUT) and h_last.shape == (B, HIDDEN)
    assert jnp.allclose(outs, outs_ref, atol=1e-5, rtol=1e-5)
    assert jnp.allclose(h_last, h_ref, atol=1e-5, rtol=1e-5)
    # every log_softmax row must normalize: logsumexp == 0
    assert jnp.allclose(jax.scipy.special.logsumexp(outs, axis=-1),
                        jnp.zeros((SEQ, B)), atol=1e-5)

    # Single-step forward() parity (matches the module's forward signature).
    o1, h1 = rnn_forward(line[0], h0, w_i2h, b_i2h, w_i2o, b_i2o)
    o1 = jax.block_until_ready(o1)
    o1_ref, h1_ref = rnn_forward_ref(line[0], h0, w_i2h, b_i2h, w_i2o, b_i2o)
    assert jnp.allclose(o1, o1_ref, atol=1e-5, rtol=1e-5)
    assert jnp.allclose(h1, h1_ref, atol=1e-5, rtol=1e-5)

    # TODO(synk): train_net()'s backward pass / SGD update and the string
    # preprocessing (lineToTensor) stay host-side; only the forward is a kernel.
    print("KERNEL_OK")
</pallas_src>

<mosaic_0001>
module attributes {stable_mosaic.version = 11 : i64} {
  func.func @rnn_seq_kernel(%arg0: memref<64x32xf32, #tpu.memory_space<vmem>>, %arg1: memref<8x64xf32, #tpu.memory_space<vmem>>, %arg2: memref<32x80xf32, #tpu.memory_space<vmem>>, %arg3: memref<64x80xf32, #tpu.memory_space<vmem>>, %arg4: memref<1x80xf32, #tpu.memory_space<vmem>>, %arg5: memref<64x16xf32, #tpu.memory_space<vmem>>, %arg6: memref<8x64xf32, #tpu.memory_space<vmem>>) attributes {dimension_semantics = [], scalar_prefetch = 0 : i64, scratch_operands = 0 : i64, tpu.core_type = #tpu.core_type<tc>} {
    %c0 = arith.constant 0 : index
    %c0_0 = arith.constant 0 : index
    %0 = vector.load %arg0[%c0, %c0_0] : memref<64x32xf32, #tpu.memory_space<vmem>>, vector<64x32xf32>
    %c0_1 = arith.constant 0 : index
    %c0_2 = arith.constant 0 : index
    %1 = vector.load %arg2[%c0_1, %c0_2] : memref<32x80xf32, #tpu.memory_space<vmem>>, vector<32x80xf32>
    %cst = arith.constant dense<0.000000e+00> : vector<64x80xf32>
    %2 = tpu.matmul %0, %1, %cst {dimension_numbers = #tpu.dot_dimension_numbers<[1], [0], [0], [1], [0, 0, 1, 1], [], []>} : vector<64x32xf32>, vector<32x80xf32>, vector<64x80xf32> -> vector<64x80xf32>
    %c0_3 = arith.constant 0 : index
    %c0_4 = arith.constant 0 : index
    %3 = vector.load %arg4[%c0_3, %c0_4] : memref<1x80xf32, #tpu.memory_space<vmem>>, vector<1x80xf32>
    %4 = vector.broadcast %3 : vector<1x80xf32> to vector<64x80xf32>
    %5 = arith.addf %2, %4 : vector<64x80xf32>
    %c0_5 = arith.constant 0 : index
    %c0_6 = arith.constant 0 : index
    %6 = vector.load %arg3[%c0_5, %c0_6] : memref<64x80xf32, #tpu.memory_space<vmem>>, vector<64x80xf32>
    %c0_7 = arith.constant 0 : index
    %c0_8 = arith.constant 0 : index
    %7 = vector.load %arg1[%c0_7, %c0_8] : memref<8x64xf32, #tpu.memory_space<vmem>>, vector<8x64xf32>
    %8 = vector.extract_strided_slice %5 {offsets = [0, 0], sizes = [8, 80], strides = [1, 1]} : vector<64x80xf32> to vector<8x80xf32>
    %cst_9 = arith.constant dense<0.000000e+00> : vector<8x80xf32>
    %9 = tpu.matmul %7, %6, %cst_9 {dimension_numbers = #tpu.dot_dimension_numbers<[1], [0], [0], [1], [0, 0, 1, 1], [], []>} : vector<8x64xf32>, vector<64x80xf32>, vector<8x80xf32> -> vector<8x80xf32>
    %10 = arith.addf %8, %9 : vector<8x80xf32>
    %11 = vector.extract_strided_slice %10 {offsets = [0, 0], sizes = [8, 64], strides = [1, 1]} : vector<8x80xf32> to vector<8x64xf32>
    %12 = vector.extract_strided_slice %10 {offsets = [0, 64], sizes = [8, 16], strides = [1, 1]} : vector<8x80xf32> to vector<8x16xf32>
    %cst_10 = arith.constant dense<0xFF800000> : vector<8xf32>
    %13 = vector.multi_reduction <maximumf>, %12, %cst_10 [1] : vector<8x16xf32> to vector<8xf32>
    %14 = vector.shape_cast %13 : vector<8xf32> to vector<8x1xf32>
    %15 = vector.broadcast %14 : vector<8x1xf32> to vector<8x16xf32>
    %16 = arith.subf %12, %15 : vector<8x16xf32>
    %17 = math.exp %16 : vector<8x16xf32>
    %cst_11 = arith.constant dense<0.000000e+00> : vector<8xf32>
    %18 = vector.multi_reduction <add>, %17, %cst_11 [1] : vector<8x16xf32> to vector<8xf32>
    %19 = vector.shape_cast %18 : vector<8xf32> to vector<8x1xf32>
    %20 = math.log %19 : vector<8x1xf32>
    %21 = vector.broadcast %20 : vector<8x1xf32> to vector<8x16xf32>
    %22 = arith.subf %16, %21 : vector<8x16xf32>
    %c0_12 = arith.constant 0 : index
    %c0_13 = arith.constant 0 : index
    %23 = vector.load %arg5[%c0_12, %c0_13] : memref<64x16xf32, #tpu.memory_space<vmem>>, vector<8x16xf32>
    tpu.vector_store %arg5[%c0_12, %c0_13], %22 {strides = array<i32>} : memref<64x16xf32, #tpu.memory_space<vmem>>, vector<8x16xf32>,
    %24 = vector.extract_strided_slice %5 {offsets = [8, 0], sizes = [8, 80], strides = [1, 1]} : vector<64x80xf32> to vector<8x80xf32>
    %cst_14 = arith.constant dense<0.000000e+00> : vector<8x80xf32>
    %25 = tpu.matmul %11, %6, %cst_14 {dimension_numbers = #tpu.dot_dimension_numbers<[1], [0], [0], [1], [0, 0, 1, 1], [], []>} : vector<8x64xf32>, vector<64x80xf32>, vector<8x80xf32> -> vector<8x80xf32>
    %26 = arith.addf %24, %25 : vector<8x80xf32>
    %27 = vector.extract_strided_slice %26 {offsets = [0, 0], sizes = [8, 64], strides = [1, 1]} : vector<8x80xf32> to vector<8x64xf32>
    %28 = vector.extract_strided_slice %26 {offsets = [0, 64], sizes = [8, 16], strides = [1, 1]} : vector<8x80xf32> to vector<8x16xf32>
    %cst_15 = arith.constant dense<0xFF800000> : vector<8xf32>
    %29 = vector.multi_reduction <maximumf>, %28, %cst_15 [1] : vector<8x16xf32> to vector<8xf32>
    %30 = vector.shape_cast %29 : vector<8xf32> to vector<8x1xf32>
    %31 = vector.broadcast %30 : vector<8x1xf32> to vector<8x16xf32>
    %32 = arith.subf %28, %31 : vector<8x16xf32>
    %33 = math.exp %32 : vector<8x16xf32>
    %cst_16 = arith.constant dense<0.000000e+00> : vector<8xf32>
    %34 = vector.multi_reduction <add>, %33, %cst_16 [1] : vector<8x16xf32> to vector<8xf32>
    %35 = vector.shape_cast %34 : vector<8xf32> to vector<8x1xf32>
    %36 = math.log %35 : vector<8x1xf32>
    %37 = vector.broadcast %36 : vector<8x1xf32> to vector<8x16xf32>
    %38 = arith.subf %32, %37 : vector<8x16xf32>
    %c8 = arith.constant 8 : index
    %c0_17 = arith.constant 0 : index
    %39 = vector.load %arg5[%c8, %c0_17] : memref<64x16xf32, #tpu.memory_space<vmem>>, vector<8x16xf32>
    tpu.vector_store %arg5[%c8, %c0_17], %38 {strides = array<i32>} : memref<64x16xf32, #tpu.memory_space<vmem>>, vector<8x16xf32>,
    %40 = vector.extract_strided_slice %5 {offsets = [16, 0], sizes = [8, 80], strides = [1, 1]} : vector<64x80xf32> to vector<8x80xf32>
    %cst_18 = arith.constant dense<0.000000e+00> : vector<8x80xf32>
    %41 = tpu.matmul %27, %6, %cst_18 {dimension_numbers = #tpu.dot_dimension_numbers<[1], [0], [0], [1], [0, 0, 1, 1], [], []>} : vector<8x64xf32>, vector<64x80xf32>, vector<8x80xf32> -> vector<8x80xf32>
    %42 = arith.addf %40, %41 : vector<8x80xf32>
    %43 = vector.extract_strided_slice %42 {offsets = [0, 0], sizes = [8, 64], strides = [1, 1]} : vector<8x80xf32> to vector<8x64xf32>
    %44 = vector.extract_strided_slice %42 {offsets = [0, 64], sizes = [8, 16], strides = [1, 1]} : vector<8x80xf32> to vector<8x16xf32>
    %cst_19 = arith.constant dense<0xFF800000> : vector<8xf32>
    %45 = vector.multi_reduction <maximumf>, %44, %cst_19 [1] : vector<8x16xf32> to vector<8xf32>
    %46 = vector.shape_cast %45 : vector<8xf32> to vector<8x1xf32>
    %47 = vector.broadcast %46 : vector<8x1xf32> to vector<8x16xf32>
    %48 = arith.subf %44, %47 : vector<8x16xf32>
    %49 = math.exp %48 : vector<8x16xf32>
    %cst_20 = arith.constant dense<0.000000e+00> : vector<8xf32>
    %50 = vector.multi_reduction <add>, %49, %cst_20 [1] : vector<8x16xf32> to vector<8xf32>
    %51 = vector.shape_cast %50 : vector<8xf32> to vector<8x1xf32>
    %52 = math.log %51 : vector<8x1xf32>
    %53 = vector.broadcast %52 : vector<8x1xf32> to vector<8x16xf32>
    %54 = arith.subf %48, %53 : vector<8x16xf32>
    %c16 = arith.constant 16 : index
    %c0_21 = arith.constant 0 : index
    %55 = vector.load %arg5[%c16, %c0_21] : memref<64x16xf32, #tpu.memory_space<vmem>>, vector<8x16xf32>
    tpu.vector_store %arg5[%c16, %c0_21], %54 {strides = array<i32>} : memref<64x16xf32, #tpu.memory_space<vmem>>, vector<8x16xf32>,
    %56 = vector.extract_strided_slice %5 {offsets = [24, 0], sizes = [8, 80], strides = [1, 1]} : vector<64x80xf32> to vector<8x80xf32>
    %cst_22 = arith.constant dense<0.000000e+00> : vector<8x80xf32>
    %57 = tpu.matmul %43, %6, %cst_22 {dimension_numbers = #tpu.dot_dimension_numbers<[1], [0], [0], [1], [0, 0, 1, 1], [], []>} : vector<8x64xf32>, vector<64x80xf32>, vector<8x80xf32> -> vector<8x80xf32>
    %58 = arith.addf %56, %57 : vector<8x80xf32>
    %59 = vector.extract_strided_slice %58 {offsets = [0, 0], sizes = [8, 64], strides = [1, 1]} : vector<8x80xf32> to vector<8x64xf32>
    %60 = vector.extract_strided_slice %58 {offsets = [0, 64], sizes = [8, 16], strides = [1, 1]} : vector<8x80xf32> to vector<8x16xf32>
    %cst_23 = arith.constant dense<0xFF800000> : vector<8xf32>
    %61 = vector.multi_reduction <maximumf>, %60, %cst_23 [1] : vector<8x16xf32> to vector<8xf32>
    %62 = vector.shape_cast %61 : vector<8xf32> to vector<8x1xf32>
    %63 = vector.broadcast %62 : vector<8x1xf32> to vector<8x16xf32>
    %64 = arith.subf %60, %63 : vector<8x16xf32>
    %65 = math.exp %64 : vector<8x16xf32>
    %cst_24 = arith.constant dense<0.000000e+00> : vector<8xf32>
    %66 = vector.multi_reduction <add>, %65, %cst_24 [1] : vector<8x16xf32> to vector<8xf32>
    %67 = vector.shape_cast %66 : vector<8xf32> to vector<8x1xf32>
    %68 = math.log %67 : vector<8x1xf32>
    %69 = vector.broadcast %68 : vector<8x1xf32> to vector<8x16xf32>
    %70 = arith.subf %64, %69 : vector<8x16xf32>
    %c24 = arith.constant 24 : index
    %c0_25 = arith.constant 0 : index
    %71 = vector.load %arg5[%c24, %c0_25] : memref<64x16xf32, #tpu.memory_space<vmem>>, vector<8x16xf32>
    tpu.vector_store %arg5[%c24, %c0_25], %70 {strides = array<i32>} : memref<64x16xf32, #tpu.memory_space<vmem>>, vector<8x16xf32>,
    %72 = vector.extract_strided_slice %5 {offsets = [32, 0], sizes = [8, 80], strides = [1, 1]} : vector<64x80xf32> to vector<8x80xf32>
    %cst_26 = arith.constant dense<0.000000e+00> : vector<8x80xf32>
    %73 = tpu.matmul %59, %6, %cst_26 {dimension_numbers = #tpu.dot_dimension_numbers<[1], [0], [0], [1], [0, 0, 1, 1], [], []>} : vector<8x64xf32>, vector<64x80xf32>, vector<8x80xf32> -> vector<8x80xf32>
    %74 = arith.addf %72, %73 : vector<8x80xf32>
    %75 = vector.extract_strided_slice %74 {offsets = [0, 0], sizes = [8, 64], strides = [1, 1]} : vector<8x80xf32> to vector<8x64xf32>
    %76 = vector.extract_strided_slice %74 {offsets = [0, 64], sizes = [8, 16], strides = [1, 1]} : vector<8x80xf32> to vector<8x16xf32>
    %cst_27 = arith.constant dense<0xFF800000> : vector<8xf32>
    %77 = vector.multi_reduction <maximumf>, %76, %cst_27 [1] : vector<8x16xf32> to vector<8xf32>
    %78 = vector.shape_cast %77 : vector<8xf32> to vector<8x1xf32>
    %79 = vector.broadcast %78 : vector<8x1xf32> to vector<8x16xf32>
    %80 = arith.subf %76, %79 : vector<8x16xf32>
    %81 = math.exp %80 : vector<8x16xf32>
    %cst_28 = arith.constant dense<0.000000e+00> : vector<8xf32>
    %82 = vector.multi_reduction <add>, %81, %cst_28 [1] : vector<8x16xf32> to vector<8xf32>
    %83 = vector.shape_cast %82 : vector<8xf32> to vector<8x1xf32>
    %84 = math.log %83 : vector<8x1xf32>
    %85 = vector.broadcast %84 : vector<8x1xf32> to vector<8x16xf32>
    %86 = arith.subf %80, %85 : vector<8x16xf32>
    %c32 = arith.constant 32 : index
    %c0_29 = arith.constant 0 : index
    %87 = vector.load %arg5[%c32, %c0_29] : memref<64x16xf32, #tpu.memory_space<vmem>>, vector<8x16xf32>
    tpu.vector_store %arg5[%c32, %c0_29], %86 {strides = array<i32>} : memref<64x16xf32, #tpu.memory_space<vmem>>, vector<8x16xf32>,
    %88 = vector.extract_strided_slice %5 {offsets = [40, 0], sizes = [8, 80], strides = [1, 1]} : vector<64x80xf32> to vector<8x80xf32>
    %cst_30 = arith.constant dense<0.000000e+00> : vector<8x80xf32>
    %89 = tpu.matmul %75, %6, %cst_30 {dimension_numbers = #tpu.dot_dimension_numbers<[1], [0], [0], [1], [0, 0, 1, 1], [], []>} : vector<8x64xf32>, vector<64x80xf32>, vector<8x80xf32> -> vector<8x80xf32>
    %90 = arith.addf %88, %89 : vector<8x80xf32>
    %91 = vector.extract_strided_slice %90 {offsets = [0, 0], sizes = [8, 64], strides = [1, 1]} : vector<8x80xf32> to vector<8x64xf32>
    %92 = vector.extract_strided_slice %90 {offsets = [0, 64], sizes = [8, 16], strides = [1, 1]} : vector<8x80xf32> to vector<8x16xf32>
    %cst_31 = arith.constant dense<0xFF800000> : vector<8xf32>
    %93 = vector.multi_reduction <maximumf>, %92, %cst_31 [1] : vector<8x16xf32> to vector<8xf32>
    %94 = vector.shape_cast %93 : vector<8xf32> to vector<8x1xf32>
    %95 = vector.broadcast %94 : vector<8x1xf32> to vector<8x16xf32>
    %96 = arith.subf %92, %95 : vector<8x16xf32>
    %97 = math.exp %96 : vector<8x16xf32>
    %cst_32 = arith.constant dense<0.000000e+00> : vector<8xf32>
    %98 = vector.multi_reduction <add>, %97, %cst_32 [1] : vector<8x16xf32> to vector<8xf32>
    %99 = vector.shape_cast %98 : vector<8xf32> to vector<8x1xf32>
    %100 = math.log %99 : vector<8x1xf32>
    %101 = vector.broadcast %100 : vector<8x1xf32> to vector<8x16xf32>
    %102 = arith.subf %96, %101 : vector<8x16xf32>
    %c40 = arith.constant 40 : index
    %c0_33 = arith.constant 0 : index
    %103 = vector.load %arg5[%c40, %c0_33] : memref<64x16xf32, #tpu.memory_space<vmem>>, vector<8x16xf32>
    tpu.vector_store %arg5[%c40, %c0_33], %102 {strides = array<i32>} : memref<64x16xf32, #tpu.memory_space<vmem>>, vector<8x16xf32>,
    %104 = vector.extract_strided_slice %5 {offsets = [48, 0], sizes = [8, 80], strides = [1, 1]} : vector<64x80xf32> to vector<8x80xf32>
    %cst_34 = arith.constant dense<0.000000e+00> : vector<8x80xf32>
    %105 = tpu.matmul %91, %6, %cst_34 {dimension_numbers = #tpu.dot_dimension_numbers<[1], [0], [0], [1], [0, 0, 1, 1], [], []>} : vector<8x64xf32>, vector<64x80xf32>, vector<8x80xf32> -> vector<8x80xf32>
    %106 = arith.addf %104, %105 : vector<8x80xf32>
    %107 = vector.extract_strided_slice %106 {offsets = [0, 0], sizes = [8, 64], strides = [1, 1]} : vector<8x80xf32> to vector<8x64xf32>
    %108 = vector.extract_strided_slice %106 {offsets = [0, 64], sizes = [8, 16], strides = [1, 1]} : vector<8x80xf32> to vector<8x16xf32>
    %cst_35 = arith.constant dense<0xFF800000> : vector<8xf32>
    %109 = vector.multi_reduction <maximumf>, %108, %cst_35 [1] : vector<8x16xf32> to vector<8xf32>
    %110 = vector.shape_cast %109 : vector<8xf32> to vector<8x1xf32>
    %111 = vector.broadcast %110 : vector<8x1xf32> to vector<8x16xf32>
    %112 = arith.subf %108, %111 : vector<8x16xf32>
    %113 = math.exp %112 : vector<8x16xf32>
    %cst_36 = arith.constant dense<0.000000e+00> : vector<8xf32>
    %114 = vector.multi_reduction <add>, %113, %cst_36 [1] : vector<8x16xf32> to vector<8xf32>
    %115 = vector.shape_cast %114 : vector<8xf32> to vector<8x1xf32>
    %116 = math.log %115 : vector<8x1xf32>
    %117 = vector.broadcast %116 : vector<8x1xf32> to vector<8x16xf32>
    %118 = arith.subf %112, %117 : vector<8x16xf32>
    %c48 = arith.constant 48 : index
    %c0_37 = arith.constant 0 : index
    %119 = vector.load %arg5[%c48, %c0_37] : memref<64x16xf32, #tpu.memory_space<vmem>>, vector<8x16xf32>
    tpu.vector_store %arg5[%c48, %c0_37], %118 {strides = array<i32>} : memref<64x16xf32, #tpu.memory_space<vmem>>, vector<8x16xf32>,
    %120 = vector.extract_strided_slice %5 {offsets = [56, 0], sizes = [8, 80], strides = [1, 1]} : vector<64x80xf32> to vector<8x80xf32>
    %cst_38 = arith.constant dense<0.000000e+00> : vector<8x80xf32>
    %121 = tpu.matmul %107, %6, %cst_38 {dimension_numbers = #tpu.dot_dimension_numbers<[1], [0], [0], [1], [0, 0, 1, 1], [], []>} : vector<8x64xf32>, vector<64x80xf32>, vector<8x80xf32> -> vector<8x80xf32>
    %122 = arith.addf %120, %121 : vector<8x80xf32>
    %123 = vector.extract_strided_slice %122 {offsets = [0, 0], sizes = [8, 64], strides = [1, 1]} : vector<8x80xf32> to vector<8x64xf32>
    %124 = vector.extract_strided_slice %122 {offsets = [0, 64], sizes = [8, 16], strides = [1, 1]} : vector<8x80xf32> to vector<8x16xf32>
    %cst_39 = arith.constant dense<0xFF800000> : vector<8xf32>
    %125 = vector.multi_reduction <maximumf>, %124, %cst_39 [1] : vector<8x16xf32> to vector<8xf32>
    %126 = vector.shape_cast %125 : vector<8xf32> to vector<8x1xf32>
    %127 = vector.broadcast %126 : vector<8x1xf32> to vector<8x16xf32>
    %128 = arith.subf %124, %127 : vector<8x16xf32>
    %129 = math.exp %128 : vector<8x16xf32>
    %cst_40 = arith.constant dense<0.000000e+00> : vector<8xf32>
    %130 = vector.multi_reduction <add>, %129, %cst_40 [1] : vector<8x16xf32> to vector<8xf32>
    %131 = vector.shape_cast %130 : vector<8xf32> to vector<8x1xf32>
    %132 = math.log %131 : vector<8x1xf32>
    %133 = vector.broadcast %132 : vector<8x1xf32> to vector<8x16xf32>
    %134 = arith.subf %128, %133 : vector<8x16xf32>
    %c56 = arith.constant 56 : index
    %c0_41 = arith.constant 0 : index
    %135 = vector.load %arg5[%c56, %c0_41] : memref<64x16xf32, #tpu.memory_space<vmem>>, vector<8x16xf32>
    tpu.vector_store %arg5[%c56, %c0_41], %134 {strides = array<i32>} : memref<64x16xf32, #tpu.memory_space<vmem>>, vector<8x16xf32>,
    %c0_42 = arith.constant 0 : index
    %c0_43 = arith.constant 0 : index
    %136 = vector.load %arg6[%c0_42, %c0_43] : memref<8x64xf32, #tpu.memory_space<vmem>>, vector<8x64xf32>
    tpu.vector_store %arg6[%c0_42, %c0_43], %123 {strides = array<i32>} : memref<8x64xf32, #tpu.memory_space<vmem>>, vector<8x64xf32>,
    return
  }
}

</mosaic_0001>

<bundles_post_ra>
// kernel: rnn_forward_seq.1
= control target key start
LH: loop header
LB: loop body
LE: loop exit
PB: predicated region body
PF: predicated region fallthrough
CT: control target
= control target key end

     0   :  { %v1365_v0 = vmov 0.0|0.0   ;;  %vm1366_vm0 = vmmov 0   ;;  %v1367_v4 = vmov 0.0   ;;  %vm41_vm1 = vcmask 261120   ;;  %s1672_s3 = inlined_call_operand.vmem [shape: f32[64,80], index: 3, kind: input, shape index: {}]   ;;  %s1673_s2 = inlined_call_operand.vmem [shape: f32[32,80], index: 2, kind: input, shape index: {}]   ;;  %s1674_s0 = inlined_call_operand.vmem [shape: f32[64,32], index: 0, kind: input, shape index: {}]   ;;  %s1675_s1 = inlined_call_operand.vmem [shape: f32[8,64], index: 1, kind: input, shape index: {}]   ;;  %s1676_s4 = inlined_call_operand.vmem [shape: f32[1,80], index: 4, kind: input, shape index: {}]   ;;  %s1677_s5 = inlined_call_operand.vmem [shape: f32[64,16], index: 5, kind: output, shape index: {0}]   ;;  %s1678_s6 = inlined_call_operand.vmem [shape: f32[8,64], index: 6, kind: output, shape index: {1}]  }
   0x1   :  { %1233 = vmatprep.subr.bf16.mxu1 %v1365_v0  ;;  %v171_v1 = vld [vmem:[%s1672_s3] sm:$0xff]  ;;  %v172_v2 = vld [vmem:[%s1672_s3 + $0x8] sm:$0xff]  ;;  %1089 = vmatprep.mubr.msk.f32.mxu1 %vm1366_vm0, %v1367_v4  ;;  %v173_v7 = vld [vmem:[%s1672_s3 + $0x10] sm:$0xff]  ;;  %vm180_vm2 = vcmask 523264   ;;  %vm255_vm3 = vcmask 654848   ;;  %vm266_vm4 = vcmask 130048  }
   0x2   :  { %v30_v3 = vld [vmem:[%s1673_s2] sm:$0xff]  ;;  %v1416_v5 = vpack.c.bf16 %v172_v2, %v171_v1  ;;  %v31_v6 = vld [vmem:[%s1673_s2 + $0x8] sm:$0xff]  ;;  %v174_v8 = vld [vmem:[%s1672_s3 + $0x18] sm:$0xff] }
   0x3   :  { %v1225_v9 = vpack.c.bf16 %v31_v6, %v30_v3  ;;  %v32_v10 = vld [vmem:[%s1673_s2 + $0x10] sm:$0xff]  ;;  %v33_v11 = vld [vmem:[%s1673_s2 + $0x18] sm:$0xff]  ;;  %v1434_v12 = vpack.c.bf16 %v174_v8, %v173_v7  ;;  %v22_v14 = vld [vmem:[%s1674_s0] sm:$0xff] }
   0x4   :  { %1235 = vmatpush3.bf16.msra.mxu1 %v1416_v5  ;;  %v1229_v13 = vpack.c.bf16 %v33_v11, %v32_v10  ;;  %v175_v15 = vld [vmem:[%s1672_s3 + $0x20] sm:$0xff]  ;;  %v176_v16 = vld [vmem:[%s1672_s3 + $0x28] sm:$0xff]  ;;  %1061 = vmatprep.mubr.msk.f32.mxu0 %vm41_vm1, %v22_v14  ;;  %v177_v18 = vld [vmem:[%s1672_s3 + $0x30] sm:$0xff] }
   0x5   :  { %1226 = vmatprep.subr.bf16.mxu0 %v1225_v9  ;;  %1236 = vmatprep.subr.bf16.mxu1 %v1365_v0  ;;  %v1448_v17 = vpack.c.bf16 %v176_v16, %v175_v15  ;;  %v178_v19 = vld [vmem:[%s1672_s3 + $0x38] sm:$0xff]  ;;  %v23_v20 = vld [vmem:[%s1674_s0 + $0x8] sm:$0xff]  ;;  %v24_v21 = vld [vmem:[%s1674_s0 + $0x10] sm:$0xff] }
   0x6   :  { %1228 = vmatpush3.bf16.msra.mxu0 %v1225_v9  ;;  %v1465_v22 = vpack.c.bf16 %v178_v19, %v177_v18  ;;  %v25_v23 = vld [vmem:[%s1674_s0 + $0x18] sm:$0xff]  ;;  %v26_v24 = vld [vmem:[%s1674_s0 + $0x20] sm:$0xff]  ;;  %v27_v26 = vld [vmem:[%s1674_s0 + $0x28] sm:$0xff] }
   0x7   :  { %1230 = vmatprep.subr.bf16.mxu0 %v1229_v13  ;;  %v179_v25 = vld [vmem:[%s1675_s1] sm:$0xff]  ;;  %v28_v27 = vld [vmem:[%s1674_s0 + $0x30] sm:$0xff]  ;;  %v29_v28 = vld [vmem:[%s1674_s0 + $0x38] sm:$0xff]  ;;  %s1368_s0 = smov 64  }
   0x8   :  { %1238 = vmatpush3.bf16.msra.mxu1 %v1434_v12  ;;  %v1519_v30 = vld [vmem:[%s1676_s4] ss:$0 sm:$0xff] }
   0x9   :  { %1239 = vmatprep.subr.bf16.mxu1 %v1365_v0 }
   0xa   :  { %1232 = vmatpush3.bf16.msra.mxu0 %v1229_v13 }
   0xb   :  { %1245 = vmatprep.subr.bf16.mxu0 %v1365_v0 }
   0xc   :  { %1241 = vmatpush3.bf16.msra.mxu1 %v1448_v17 }
   0xd   :  { %1062 = vmatmul.mubr.msk.f32.vlgmr.msra.gmra.mrb[0].mxu0 %vm41_vm1, %v23_v20  ;;  %1242 = vmatprep.subr.bf16.mxu1 %v1365_v0 }
   0xe   :  { %1247 = vmatpush3.bf16.msra.mxu0 %v1416_v5  ;;  %1064 = vmatprep.mubr.msk.f32.mxu0 %vm41_vm1, %v24_v21 }
   0xf   :  { %1248 = vmatprep.subr.bf16.mxu0 %v1365_v0 }
  0x10   :  { %1244 = vmatpush3.bf16.msra.mxu1 %v1465_v22 }
  0x11   :  { %1065 = vmatmul.mubr.msk.f32.gmra.mrb[2].mxu0 %vm41_vm1, %v25_v23  ;;  %1257 = vmatprep.subr.bf16.mxu1 %v1365_v0 }
  0x12   :  { %1250 = vmatpush3.bf16.msra.mxu0 %v1434_v12  ;;  %1067 = vmatprep.mubr.msk.f32.mxu0 %vm41_vm1, %v26_v24 }
  0x13   :  { %1090 = vmatmul.mubr.msk.f32.vlgmr.msra.gmra.mrb[0].mxu1 %vm180_vm2, %v179_v25  ;;  %1251 = vmatprep.subr.bf16.mxu0 %v1365_v0 }
  0x14   :  { %1259 = vmatpush3.bf16.msra.mxu1 %v1416_v5  ;;  %1127 = vmatprep.mubr.msk.f32.mxu1 %vm1366_vm0, %v1367_v4 }
  0x15   :  { %1068 = vmatmul.mubr.msk.f32.gmra.mrb[4].mxu0 %vm41_vm1, %v27_v26  ;;  %1260 = vmatprep.subr.bf16.mxu1 %v1365_v0 }
  0x16   :  { %1253 = vmatpush3.bf16.msra.mxu0 %v1448_v17  ;;  %1070 = vmatprep.mubr.msk.f32.mxu0 %vm41_vm1, %v28_v27 }
  0x17   :  { %1254 = vmatprep.subr.bf16.mxu0 %v1365_v0 }
  0x18   :  { %1262 = vmatpush3.bf16.msra.mxu1 %v1434_v12 }
  0x19   :  { %1263 = vmatprep.subr.bf16.mxu1 %v1365_v0  ;;  %1071 = vmatmul.mubr.msk.f32.gmra.mrb[6].mxu0 %vm41_vm1, %v29_v28 }
  0x1a   :  { %1256 = vmatpush3.bf16.msra.mxu0 %v1465_v22  ;;  %1108 = vmatprep.mubr.msk.f32.mxu0 %vm1366_vm0, %v1367_v4 }
  0x1b   :  { %1269 = vmatprep.subr.bf16.mxu0 %v1365_v0 }
  0x1c   :  { %1265 = vmatpush3.bf16.msra.mxu1 %v1448_v17 }
  0x1d   :  { %1266 = vmatprep.subr.bf16.mxu1 %v1365_v0 }
  0x20   :  { %1268 = vmatpush3.bf16.msra.mxu1 %v1465_v22 }
  0x21   :  { %1281 = vmatprep.subr.bf16.mxu1 %v1365_v0 }
  0xe0   :  { %v1063_v29 = vpop.f32.mrb[0].mxu0 }
  0xe1   :  { %v132_v31 = vpop.f32.mrb[1].mxu0  ;;  %v138_v47 = vadd.f32 %v1063_v29, %v1519_v30 }
  0xe2   :  { %v133_v32 = vadd.f32 %v1519_v30, %v132_v31 }
  0xe4   :  { %v1534_v37 = vpop.f32.mrb[2].mxu0 }
  0xe5   :  { %v142_v38 = vpop.f32.mrb[3].mxu0  ;;  %v148_v15 = vadd.f32 %v1534_v37, %v1519_v30 }
  0xe6   :  { %v250_v33 = vpop.f32.mrb[0].mxu1  ;;  %v143_v59 = vadd.f32 %v1519_v30, %v142_v38 }
  0xe7   :  { %v254_v34 = vadd.f32 %v250_v33, %v133_v32  ;;  %v1091_v35 = vpop.f32.mrb[1].mxu1 }
  0xe8   :  { %v1536_v39 = vpop.f32.mrb[4].mxu0 }
  0xe9   :  { %1109 = vmatmul.mubr.msk.f32.vlgmr.msra.gmra.mrb[8].mxu0 %vm180_vm2, %v254_v34  ;;  %v256_v36 = vsel %vm255_vm3, %v254_v34, -inf  ;;  %v1538_v40 = vpop.f32.mrb[5].mxu0 }
  0xea   :  { %257 = vmax.xlane.f32.xlu0 %v256_v36  ;;  %1271 = vmatpush3.bf16.msra.mxu0 %v1416_v5  ;;  %v153_v29 = vadd.f32 %v1519_v30, %v1538_v40 }
  0xeb   :  { %1272 = vmatprep.subr.bf16.mxu0 %v1365_v0  ;;  %1146 = vmatprep.mubr.msk.f32.mxu0 %vm1366_vm0, %v1367_v4 }
  0xec   :  { %v1540_v41 = vpop.f32.mrb[6].mxu0 }
  0xed   :  { %v1542_v42 = vpop.f32.mrb[7].mxu0 }
  0xee   :  { %1274 = vmatpush3.bf16.msra.mxu0 %v1434_v12 }
  0xef   :  { %1275 = vmatprep.subr.bf16.mxu0 %v1365_v0 }
  0xf2   :  { %1277 = vmatpush3.bf16.msra.mxu0 %v1448_v17 }
  0xf3   :  { %1278 = vmatprep.subr.bf16.mxu0 %v1365_v0 }
  0xf6   :  { %1280 = vmatpush3.bf16.msra.mxu0 %v1465_v22 }
  0xf7   :  { %1293 = vmatprep.subr.bf16.mxu0 %v1365_v0 }
 0x177   :  { %v258_v43 = vpop.xlane.xlu0 %257 }
 0x178   :  { %v259_v44 = vsub.f32 %v254_v34, %v258_v43 }
 0x17a   :  { %v260_v45 = vmul.f32 1.442695, %v259_v44 }
 0x17c   :  { %1333 = vpow2.f32 %v260_v45 }
 0x186   :  { %v1334_v46 = vpop.eup %1333 }
 0x187   :  { %263 = vrot.lane.b32.xlu0 %v1334_v46, %s1368_s0 }
 0x1bc   :  { %v347_v48 = vpop.f32.mrb[8].mxu0 }
 0x1bd   :  { %v351_v49 = vadd.f32 %v347_v48, %v138_v47  ;;  %v1110_v50 = vpop.f32.mrb[9].mxu0 }
 0x1bf   :  { %1128 = vmatmul.mubr.msk.f32.vlgmr.msra.gmra.mrb[2].mxu1 %vm180_vm2, %v351_v49  ;;  %v352_v51 = vsel %vm255_vm3, %v351_v49, -inf }
 0x1c0   :  { %353 = vmax.xlane.f32.xlu1 %v352_v51  ;;  %1283 = vmatpush3.bf16.msra.mxu1 %v1416_v5 }
 0x1c1   :  { %1284 = vmatprep.subr.bf16.mxu1 %v1365_v0  ;;  %1165 = vmatprep.mubr.msk.f32.mxu1 %vm1366_vm0, %v1367_v4 }
 0x1c4   :  { %1286 = vmatpush3.bf16.msra.mxu1 %v1434_v12 }
 0x1c5   :  { %1287 = vmatprep.subr.bf16.mxu1 %v1365_v0 }
 0x1c8   :  { %1289 = vmatpush3.bf16.msra.mxu1 %v1448_v17 }
 0x1c9   :  { %1290 = vmatprep.subr.bf16.mxu1 %v1365_v0 }
 0x1cc   :  { %1292 = vmatpush3.bf16.msra.mxu1 %v1465_v22 }
 0x1cd   :  { %1305 = vmatprep.subr.bf16.mxu1 %v1365_v0 }
 0x1f9   :  { %v264_v52 = vpop.permute.xlu0 %263 }
 0x1fa   :  { %v267_v53 = vsel %vm266_vm4, %v264_v52, 0.0 }
 0x1fb   :  { %268 = vadd.xlane.f32.xlu1 %v267_v53 }
 0x24d   :  { %v354_v54 = vpop.xlane.xlu1 %353 }
 0x24e   :  { %v355_v55 = vsub.f32 %v351_v49, %v354_v54 }
 0x250   :  { %v356_v56 = vmul.f32 1.442695, %v355_v55 }
 0x252   :  { %1335 = vpow2.f32 %v356_v56 }
 0x25c   :  { %v1336_v57 = vpop.eup %1335 }
 0x25d   :  { %359 = vrot.lane.b32.xlu0 %v1336_v57, %s1368_s0 }
 0x288   :  { %v269_v58 = vpop.xlane.xlu1 %268 }
 0x289   :  { %1337 = vlog2.f32 %v269_v58 }
 0x292   :  { %v442_v60 = vpop.f32.mrb[2].mxu1 }
 0x293   :  { %v1338_v61 = vpop.eup %1337  ;;  %v446_v62 = vadd.f32 %v442_v60, %v143_v59  ;;  %v1129_v63 = vpop.f32.mrb[3].mxu1 }
 0x294   :  { %v271_v1 = vmul.f32 0.6931472, %v1338_v61 }
 0x295   :  { %1147 = vmatmul.mubr.msk.f32.vlgmr.msra.gmra.mrb[10].mxu0 %vm180_vm2, %v446_v62  ;;  %v447_v2 = vsel %vm255_vm3, %v446_v62, -inf }
 0x296   :  { %448 = vmax.xlane.f32.xlu0 %v447_v2  ;;  %v272_v3 = vsub.f32 %v259_v44, %v271_v1  ;;  %1295 = vmatpush3.bf16.msra.mxu0 %v1416_v5 }
 0x297   :  { %1296 = vmatprep.subr.bf16.mxu0 %v1365_v0  ;;  %1184 = vmatprep.mubr.msk.f32.mxu0 %vm1366_vm0, %v1367_v4 }
 0x298   :  { %274 = vrot.lane.b32.xlu1 %v272_v3, %s1368_s0 }
 0x29a   :  { %1298 = vmatpush3.bf16.msra.mxu0 %v1434_v12 }
 0x29b   :  { %1299 = vmatprep.subr.bf16.mxu0 %v1365_v0 }
 0x29e   :  { %1301 = vmatpush3.bf16.msra.mxu0 %v1448_v17 }
 0x29f   :  { %1302 = vmatprep.subr.bf16.mxu0 %v1365_v0 }
 0x2a2   :  { %1304 = vmatpush3.bf16.msra.mxu0 %v1465_v22 }
 0x2a3   :  { %1317 = vmatprep.subr.bf16.mxu0 %v1365_v0 }
 0x2cf   :  { %v360_v6 = vpop.permute.xlu0 %359 }
 0x2d0   :  { %v362_v7 = vsel %vm266_vm4, %v360_v6, 0.0 }
 0x2d1   :  { %363 = vadd.xlane.f32.xlu0 %v362_v7 }
 0x30a   :  { %v275_v8 = vpop.permute.xlu1 %274 }
 0x30b   :  { %277 = vst.msk [vmem:[%s1677_s5] sm:$0xff] %vm266_vm4, %v275_v8 }
 0x323   :  { %v449_v9 = vpop.xlane.xlu0 %448 }
 0x324   :  { %v450_v10 = vsub.f32 %v446_v62, %v449_v9 }
 0x326   :  { %v451_v11 = vmul.f32 1.442695, %v450_v10 }
 0x328   :  { %1339 = vpow2.f32 %v451_v11 }
 0x332   :  { %v1340_v13 = vpop.eup %1339 }
 0x333   :  { %454 = vrot.lane.b32.xlu0 %v1340_v13, %s1368_s0 }
 0x35e   :  { %v364_v14 = vpop.xlane.xlu0 %363 }
 0x35f   :  { %1341 = vlog2.f32 %v364_v14 }
 0x368   :  { %v537_v16 = vpop.f32.mrb[10].mxu0 }
 0x369   :  { %v1342_v18 = vpop.eup %1341  ;;  %v1582_v19 = vadd.f32 %v537_v16, %v148_v15  ;;  %v1148_v20 = vpop.f32.mrb[11].mxu0 }
 0x36a   :  { %v366_v21 = vmul.f32 0.6931472, %v1342_v18 }
 0x36b   :  { %1166 = vmatmul.mubr.msk.f32.vlgmr.msra.gmra.mrb[4].mxu1 %vm180_vm2, %v1582_v19  ;;  %v542_v23 = vsel %vm255_vm3, %v1582_v19, -inf }
 0x36c   :  { %543 = vmax.xlane.f32.xlu0 %v542_v23  ;;  %v367_v24 = vsub.f32 %v355_v55, %v366_v21  ;;  %1307 = vmatpush3.bf16.msra.mxu1 %v1416_v5 }
 0x36d   :  { %1308 = vmatprep.subr.bf16.mxu1 %v1365_v0  ;;  %1203 = vmatprep.mubr.msk.f32.mxu1 %vm1366_vm0, %v1367_v4 }
 0x36e   :  { %369 = vrot.lane.b32.xlu1 %v367_v24, %s1368_s0 }
 0x370   :  { %1310 = vmatpush3.bf16.msra.mxu1 %v1434_v12 }
 0x371   :  { %1311 = vmatprep.subr.bf16.mxu1 %v1365_v0 }
 0x374   :  { %1313 = vmatpush3.bf16.msra.mxu1 %v1448_v17 }
 0x375   :  { %1314 = vmatprep.subr.bf16.mxu1 %v1365_v0 }
 0x378   :  { %1316 = vmatpush3.bf16.msra.mxu1 %v1465_v22 }
 0x3a5   :  { %v455_v25 = vpop.permute.xlu0 %454 }
 0x3a6   :  { %v457_v26 = vsel %vm266_vm4, %v455_v25, 0.0 }
 0x3a7   :  { %458 = vadd.xlane.f32.xlu1 %v457_v26 }
 0x3e0   :  { %v370_v27 = vpop.permute.xlu1 %369 }
 0x3e1   :  { %372 = vst.msk [vmem:[%s1677_s5 + $0x8] sm:$0xff] %vm266_vm4, %v370_v27 }
 0x3f9   :  { %v544_v38 = vpop.xlane.xlu0 %543 }
 0x3fa   :  { %v545_v50 = vsub.f32 %v1582_v19, %v544_v38 }
 0x3fc   :  { %v546_v51 = vmul.f32 1.442695, %v545_v50 }
 0x434   :  { %v459_v28 = vpop.xlane.xlu1 %458 }
 0x435   :  { %1343 = vlog2.f32 %v459_v28 }
 0x436   :  { %1345 = vpow2.f32 %v546_v51 }
 0x43e   :  { %v632_v31 = vpop.f32.mrb[4].mxu1 }
 0x43f   :  { %v1344_v32 = vpop.eup %1343  ;;  %v636_v33 = vadd.f32 %v632_v31, %v153_v29  ;;  %v1167_v34 = vpop.f32.mrb[5].mxu1 }
 0x440   :  { %v461_v35 = vmul.f32 0.6931472, %v1344_v32  ;;  %v1346_v52 = vpop.eup %1345 }
 0x441   :  { %1185 = vmatmul.mubr.msk.f32.vlgmr.msra.gmra.mrb[12].mxu0 %vm180_vm2, %v636_v33  ;;  %v637_v36 = vsel %vm255_vm3, %v636_v33, -inf }
 0x442   :  { %638 = vmax.xlane.f32.xlu1 %v637_v36  ;;  %v462_v37 = vsub.f32 %v450_v10, %v461_v35  ;;  %1319 = vmatpush3.bf16.msra.mxu0 %v1416_v5 }
 0x443   :  { %1320 = vmatprep.subr.bf16.mxu0 %v1365_v0  ;;  %1222 = vmatprep.mubr.msk.f32.mxu0 %vm1366_vm0, %v1367_v4  ;;  %v158_v4 = vadd.f32 %v1536_v39, %v1519_v30  ;;  %v168_v39 = vadd.f32 %v1540_v41, %v1519_v30 }
 0x444   :  { %464 = vrot.lane.b32.xlu0 %v462_v37, %s1368_s0 }
 0x446   :  { %1322 = vmatpush3.bf16.msra.mxu0 %v1434_v12 }
 0x447   :  { %1323 = vmatprep.subr.bf16.mxu0 %v1365_v0 }
 0x44a   :  { %1325 = vmatpush3.bf16.msra.mxu0 %v1448_v17 }
 0x44b   :  { %1326 = vmatprep.subr.bf16.mxu0 %v1365_v0  ;;  %v163_v0 = vadd.f32 %v1519_v30, %v1542_v42 }
 0x44e   :  { %1328 = vmatpush3.bf16.msra.mxu0 %v1465_v22 }
 0x4b6   :  { %v465_v40 = vpop.permute.xlu0 %464 }
 0x4b7   :  { %467 = vst.msk [vmem:[%s1677_s5 + $0x10] sm:$0xff] %vm266_vm4, %v465_v40 }
 0x4cf   :  { %v639_v53 = vpop.xlane.xlu1 %638 }
 0x4d0   :  { %v640_v57 = vsub.f32 %v636_v33, %v639_v53 }
 0x4d2   :  { %v641_v58 = vmul.f32 1.442695, %v640_v57 }
 0x514   :  { %v727_v5 = vpop.f32.mrb[12].mxu0 }
 0x515   :  { %v731_v12 = vadd.f32 %v727_v5, %v158_v4  ;;  %v1186_v43 = vpop.f32.mrb[13].mxu0 }
 0x517   :  { %1204 = vmatmul.mubr.msk.f32.vlgmr.msra.gmra.mrb[6].mxu1 %vm180_vm2, %v731_v12  ;;  %v732_v17 = vsel %vm255_vm3, %v731_v12, -inf }
 0x518   :  { %733 = vmax.xlane.f32.xlu1 %v732_v17 }
 0x5a5   :  { %v734_v30 = vpop.xlane.xlu1 %733 }
 0x5a6   :  { %v735_v6 = vsub.f32 %v731_v12, %v734_v30 }
 0x5a8   :  { %v736_v7 = vmul.f32 1.442695, %v735_v6 }
 0x5ea   :  { %v822_v22 = vpop.f32.mrb[6].mxu1 }
 0x5eb   :  { %v826_v44 = vadd.f32 %v822_v22, %v163_v0  ;;  %v1205_v45 = vpop.f32.mrb[7].mxu1 }
 0x5ed   :  { %1223 = vmatmul.mubr.msk.f32.vlgmr.msra.gmra.mrb[14].mxu0 %vm180_vm2, %v826_v44  ;;  %v827_v46 = vsel %vm255_vm3, %v826_v44, -inf }
 0x5ee   :  { %828 = vmax.xlane.f32.xlu0 %v827_v46 }
 0x67b   :  { %v829_v63 = vpop.xlane.xlu0 %828 }
 0x67c   :  { %v830_v10 = vsub.f32 %v826_v44, %v829_v63 }
 0x67e   :  { %v831_v11 = vmul.f32 1.442695, %v830_v10 }
 0x6c0   :  { %v917_v47 = vpop.f32.mrb[14].mxu0 }
 0x6c1   :  { %v921_v48 = vadd.f32 %v917_v47, %v168_v39  ;;  %v1224_v49 = vpop.f32.mrb[15].mxu0 }
 0x6c3   :  { %943 = vst.msk [vmem:[%s1678_s6] sm:$0xff] %vm180_vm2, %v921_v48  ;;  %v922_v42 = vsel %vm255_vm3, %v921_v48, -inf }
 0x6c4   :  { %923 = vmax.xlane.f32.xlu1 %v922_v42 }
 0x6d5   :  { %549 = vrot.lane.b32.xlu1 %v1346_v52, %s1368_s0 }
 0x751   :  { %v924_v41 = vpop.xlane.xlu1 %923 }
 0x752   :  { %v925_v13 = vsub.f32 %v921_v48, %v924_v41 }
 0x754   :  { %v926_v14 = vmul.f32 1.442695, %v925_v13 }
 0x755   :  { %v550_v54 = vpop.permute.xlu1 %549 }
 0x756   :  { %v552_v55 = vsel %vm266_vm4, %v550_v54, 0.0 }
 0x757   :  { %553 = vadd.xlane.f32.xlu1 %v552_v55 }
 0x7e4   :  { %v554_v56 = vpop.xlane.xlu1 %553 }
 0x7e5   :  { %1347 = vlog2.f32 %v554_v56 }
 0x7e6   :  { %1349 = vpow2.f32 %v641_v58 }
 0x7e7   :  { %1351 = vpow2.f32 %v736_v7 }
 0x7ef   :  { %v1348_v59 = vpop.eup %1347 }
 0x7f0   :  { %v556_v60 = vmul.f32 0.6931472, %v1348_v59  ;;  %v1350_v62 = vpop.eup %1349 }
 0x7f1   :  { %v1352_v8 = vpop.eup %1351 }
 0x7f2   :  { %v557_v61 = vsub.f32 %v545_v50, %v556_v60 }
 0x7f4   :  { %559 = vrot.lane.b32.xlu0 %v557_v61, %s1368_s0 }
 0x7f8   :  { %644 = vrot.lane.b32.xlu0 %v1350_v62, %s1368_s0 }
 0x866   :  { %v560_v1 = vpop.permute.xlu0 %559 }
 0x867   :  { %562 = vst.msk [vmem:[%s1677_s5 + $0x18] sm:$0xff] %vm266_vm4, %v560_v1 }
 0x86a   :  { %v645_v2 = vpop.permute.xlu0 %644 }
 0x86b   :  { %v647_v3 = vsel %vm266_vm4, %v645_v2, 0.0 }
 0x86c   :  { %648 = vadd.xlane.f32.xlu0 %v647_v3 }
 0x882   :  { %739 = vrot.lane.b32.xlu0 %v1352_v8, %s1368_s0 }
 0x8f9   :  { %v649_v9 = vpop.xlane.xlu0 %648 }
 0x8fa   :  { %1353 = vlog2.f32 %v649_v9 }
 0x8fb   :  { %1355 = vpow2.f32 %v831_v11 }
 0x8fc   :  { %1357 = vpow2.f32 %v926_v14 }
 0x8fd   :  { %v740_v21 = vpop.permute.xlu0 %739 }
 0x8fe   :  { %v742_v23 = vsel %vm266_vm4, %v740_v21, 0.0 }
 0x904   :  { %v1354_v15 = vpop.eup %1353 }
 0x905   :  { %v651_v16 = vmul.f32 0.6931472, %v1354_v15  ;;  %v1356_v19 = vpop.eup %1355 }
 0x906   :  { %v1358_v20 = vpop.eup %1357 }
 0x907   :  { %v652_v18 = vsub.f32 %v640_v57, %v651_v16 }
 0x909   :  { %654 = vrot.lane.b32.xlu1 %v652_v18, %s1368_s0 }
 0x90d   :  { %834 = vrot.lane.b32.xlu1 %v1356_v19, %s1368_s0 }
 0x911   :  { %929 = vrot.lane.b32.xlu1 %v1358_v20, %s1368_s0 }
 0x935   :  { %743 = vadd.xlane.f32.xlu1 %v742_v23 }
 0x97b   :  { %v655_v24 = vpop.permute.xlu1 %654 }
 0x97c   :  { %657 = vst.msk [vmem:[%s1677_s5 + $0x20] sm:$0xff] %vm266_vm4, %v655_v24 }
 0x97f   :  { %v835_v25 = vpop.permute.xlu1 %834 }
 0x980   :  { %v837_v32 = vsel %vm266_vm4, %v835_v25, 0.0 }
 0x983   :  { %v930_v26 = vpop.permute.xlu1 %929 }
 0x984   :  { %v932_v33 = vsel %vm266_vm4, %v930_v26, 0.0 }
 0x9c2   :  { %v744_v27 = vpop.xlane.xlu1 %743 }
 0x9c3   :  { %1359 = vlog2.f32 %v744_v27 }
 0x9cd   :  { %v1360_v28 = vpop.eup %1359 }
 0x9ce   :  { %v746_v29 = vmul.f32 0.6931472, %v1360_v28 }
 0x9d0   :  { %v747_v31 = vsub.f32 %v735_v6, %v746_v29 }
 0x9d2   :  { %749 = vrot.lane.b32.xlu0 %v747_v31, %s1368_s0 }
 0x9f1   :  { %838 = vadd.xlane.f32.xlu0 %v837_v32 }
 0x9f5   :  { %933 = vadd.xlane.f32.xlu0 %v932_v33 }
 0xa44   :  { %v750_v34 = vpop.permute.xlu0 %749 }
 0xa45   :  { %752 = vst.msk [vmem:[%s1677_s5 + $0x28] sm:$0xff] %vm266_vm4, %v750_v34 }
 0xa7e   :  { %v839_v35 = vpop.xlane.xlu0 %838 }
 0xa7f   :  { %1361 = vlog2.f32 %v839_v35 }
 0xa82   :  { %v934_v36 = vpop.xlane.xlu0 %933 }
 0xa83   :  { %1363 = vlog2.f32 %v934_v36 }
 0xa89   :  { %v1362_v37 = vpop.eup %1361 }
 0xa8a   :  { %v841_v38 = vmul.f32 0.6931472, %v1362_v37 }
 0xa8c   :  { %v842_v40 = vsub.f32 %v830_v10, %v841_v38 }
 0xa8d   :  { %v1364_v4 = vpop.eup %1363 }
 0xa8e   :  { %v936_v5 = vmul.f32 0.6931472, %v1364_v4  ;;  %844 = vrot.lane.b32.xlu1 %v842_v40, %s1368_s0 }
 0xa90   :  { %v937_v12 = vsub.f32 %v925_v13, %v936_v5 }
 0xa92   :  { %939 = vrot.lane.b32.xlu0 %v937_v12, %s1368_s0 }
 0xb00   :  { %v845_v43 = vpop.permute.xlu1 %844 }
 0xb01   :  { %847 = vst.msk [vmem:[%s1677_s5 + $0x30] sm:$0xff] %vm266_vm4, %v845_v43 }
 0xb04   :  { %v940_v17 = vpop.permute.xlu0 %939 }
 0xb05   :  { %942 = vst.msk [vmem:[%s1677_s5 + $0x38] sm:$0xff] %vm266_vm4, %v940_v17 }

</bundles_post_ra>
